<compile_context>
chip_gen: v7x
topology: tpu7x:2x2x1
jax: 0.10.0
libtpu: 0.0.40
codegen_flags: <defaults>
</compile_context>

<pallas_src>
import jax
import jax.numpy as jnp
from jax.experimental import pallas as pl
from jax.experimental.pallas import tpu as pltpu

LANE = 128            # vreg lane width
MAX_TILE_ROWS = 2048  # 2048 x 128 f32 = 1 MiB block; 2x double-buffered ~4 MiB VMEM


# ----------------------------------------------------------------------------
# Backward kernel: grad_input = -coeff * grad_output   (pure VPU elementwise)
# ----------------------------------------------------------------------------
def _neg_scale_kernel(coeff_ref, g_ref, o_ref):
    neg_coeff = -coeff_ref[0]                                   # f32 scalar (SMEM)
    o_ref[...] = (g_ref[...].astype(jnp.float32) * neg_coeff).astype(o_ref.dtype)


def _neg_scale_call(coeff1, g2d):
    rows, _ = g2d.shape
    tile_r = min(MAX_TILE_ROWS, rows)        # full dim if small, else aligned 2048
    nbytes = g2d.size * g2d.dtype.itemsize
    return pl.pallas_call(
        _neg_scale_kernel,
        out_shape=jax.ShapeDtypeStruct(g2d.shape, g2d.dtype),
        grid=(pl.cdiv(rows, tile_r),),
        in_specs=[
            pl.BlockSpec(memory_space=pltpu.MemorySpace.SMEM),   # runtime coeff
            pl.BlockSpec((tile_r, LANE), lambda i: (i, 0)),      # grad tile
        ],
        out_specs=pl.BlockSpec((tile_r, LANE), lambda i: (i, 0)),
        input_output_aliases={1: 0},          # dx overwrites dy in place
        compiler_params=pltpu.CompilerParams(
            dimension_semantics=("parallel",)),
        cost_estimate=pl.CostEstimate(
            flops=g2d.size, transcendentals=0, bytes_accessed=2 * nbytes),
    )(coeff1, g2d)


def _reverse_grad(g, coeff):
    """Compute -coeff * g with a lane-dense streaming Pallas kernel."""
    n = g.size
    if n == 0:
        return g
    shape = g.shape
    coeff1 = coeff.reshape(1).astype(jnp.float32)
    if n % LANE == 0:
        # Zero-copy view as (rows, 128): every store is an unmasked 128-wide vst.
        out2d = _neg_scale_call(coeff1, g.reshape(n // LANE, LANE))
        return out2d.reshape(shape)
    # Rare ragged size: pad the flat vector up to a lane multiple, slice back.
    rows = pl.cdiv(n, LANE)
    flat = jnp.pad(g.reshape(-1), (0, rows * LANE - n))
    out2d = _neg_scale_call(coeff1, flat.reshape(rows, LANE))
    return out2d.reshape(-1)[:n].reshape(shape)


# ----------------------------------------------------------------------------
# GradientReverseFunction / GradientReverseLayer equivalents
# ----------------------------------------------------------------------------
@jax.custom_vjp
def _grl(x, coeff):
    # Forward of GradientReverseFunction: output = input * 1.0  (identity).
    return x


def _grl_fwd(x, coeff):
    return x, coeff


def _grl_bwd(coeff, g):
    # PyTorch returns (grad_output.neg() * coeff, None); coeff gets a zero cotangent.
    return _reverse_grad(g, coeff), jnp.zeros_like(coeff)


_grl.defvjp(_grl_fwd, _grl_bwd)


def gradient_reverse(x, coeff=1.0):
    """JAX equivalent of GradientReverseFunction.apply(x, coeff)."""
    return _grl(x, jnp.asarray(coeff, jnp.float32))


class GradientReverseLayer:
    """Mirror of the PyTorch nn.Module: forward(x, coeff=1.0)."""

    def __call__(self, x, coeff=1.0):
        return gradient_reverse(x, coeff)


# ----------------------------------------------------------------------------
# Self-test
# ----------------------------------------------------------------------------
if __name__ == "__main__":
    key = jax.random.PRNGKey(0)
    x = jax.random.normal(key, (2, 4, 16, 16), jnp.float32)
    coeff = 0.5
    layer = GradientReverseLayer()

    # Forward: identity (value semantics of `input * 1.0`), zero extra HBM traffic.
    y = layer(x, coeff)
    jax.block_until_ready(y)
    assert y.shape == x.shape and y.dtype == x.dtype
    assert bool(jnp.all(y == x))

    # Backward: d/dx sum(grl(x)) == -coeff everywhere (Pallas kernel path).
    grad = jax.grad(lambda t: jnp.sum(gradient_reverse(t, coeff)))(x)
    jax.block_until_ready(grad)
    assert bool(jnp.allclose(grad, jnp.full_like(x, -coeff), atol=1e-6))

    # Traced (runtime) coeff inside jit: single compile, two different coeffs.
    gfn = jax.jit(lambda t, c: jax.grad(
        lambda u: jnp.sum(gradient_reverse(u, c)))(t))
    g1 = gfn(x, jnp.float32(0.3))
    g2 = gfn(x, jnp.float32(0.7))
    jax.block_until_ready((g1, g2))
    assert bool(jnp.allclose(g1, jnp.full_like(x, -0.3), atol=1e-6))
    assert bool(jnp.allclose(g2, jnp.full_like(x, -0.7), atol=1e-6))

    # bf16 path (zero-copy layout) and ragged path (pad fallback).
    xb = jax.random.normal(key, (4, 128), jnp.float32).astype(jnp.bfloat16)
    gb = jax.grad(
        lambda t: jnp.sum(gradient_reverse(t, 2.0).astype(jnp.float32)))(xb)
    jax.block_until_ready(gb)
    assert bool(jnp.allclose(gb.astype(jnp.float32), -2.0, atol=1e-2))

    xr = jax.random.normal(key, (5, 7), jnp.float32)
    gr = jax.grad(lambda t: jnp.sum(gradient_reverse(t, 1.5)))(xr)
    jax.block_until_ready(gr)
    assert bool(jnp.allclose(gr, jnp.full_like(xr, -1.5), atol=1e-6))

    print("KERNEL_OK")
</pallas_src>

<mosaic_0001>
module attributes {stable_mosaic.version = 11 : i64} {
  func.func @_neg_scale_kernel(%arg0: i32, %arg1: memref<1xf32, #tpu.memory_space<smem>>, %arg2: memref<16x128xf32, #tpu.memory_space<vmem>>, %arg3: memref<16x128xf32, #tpu.memory_space<vmem>>) attributes {dimension_semantics = [#tpu.dimension_semantics<parallel>], iteration_bounds = array<i64: 1>, scalar_prefetch = 0 : i64, scratch_operands = 0 : i64, tpu.core_type = #tpu.core_type<tc>, window_params = [{transform_indices = @transform_0, window_bounds = array<i64: 1>}, {transform_indices = @transform_1, window_bounds = array<i64: 16, 128>}, {transform_indices = @transform_2, window_bounds = array<i64: 16, 128>}]} {
    %c0 = arith.constant 0 : index
    %0 = memref.load %arg1[%c0] : memref<1xf32, #tpu.memory_space<smem>>
    %cst = arith.constant 0.000000e+00 : f32
    %1 = arith.subf %cst, %0 : f32
    %c0_0 = arith.constant 0 : index
    %c0_1 = arith.constant 0 : index
    %2 = vector.load %arg2[%c0_0, %c0_1] : memref<16x128xf32, #tpu.memory_space<vmem>>, vector<16x128xf32>
    %3 = vector.broadcast %1 : f32 to vector<16x128xf32>
    %4 = arith.mulf %2, %3 : vector<16x128xf32>
    %c0_2 = arith.constant 0 : index
    %c0_3 = arith.constant 0 : index
    %5 = vector.load %arg3[%c0_2, %c0_3] : memref<16x128xf32, #tpu.memory_space<vmem>>, vector<16x128xf32>
    tpu.vector_store %arg3[%c0_2, %c0_3], %4 {strides = array<i32>} : memref<16x128xf32, #tpu.memory_space<vmem>>, vector<16x128xf32>,
    return
  }
  func.func @transform_0(%arg0: i32) -> i32 {
    %c0_i32 = arith.constant 0 : i32
    %c0_i32_0 = arith.constant 0 : i32
    return %c0_i32 : i32
  }
  func.func @transform_1(%arg0: i32) -> (i32, i32) {
    %c0_i32 = arith.constant 0 : i32
    %c0_i32_0 = arith.constant 0 : i32
    return %arg0, %c0_i32 : i32, i32
  }
  func.func @transform_2(%arg0: i32) -> (i32, i32) {
    %c0_i32 = arith.constant 0 : i32
    %c0_i32_0 = arith.constant 0 : i32
    return %arg0, %c0_i32 : i32, i32
  }
}

</mosaic_0001>

<bundles_post_ra>
// kernel: tpu_custom_call.1
= control target key start
LH: loop header
LB: loop body
LE: loop exit
PB: predicated region body
PF: predicated region fallthrough
CT: control target
= control target key end

     0   :  { %8 = vsyncpa [#allocation4], 0  ;;  %s157_s0 = inlined_call_operand.<no memory space> [shape: f32[1], index: 0, kind: input, shape index: {}]   ;;  %s158_s1 = inlined_call_operand.hbm [shape: f32[16,128], index: 1, kind: input, shape index: {}, may-alias: {1,2}]   ;;  %s159_s2 = inlined_call_operand.hbm [shape: f32[16,128], index: 2, kind: output, shape index: {}, may-alias: {1,2}]  }
   0x1   :  { %9 = vsyncpa [#allocation5], 0  ;;  %s105_s9 = smov [#allocation3]   ;;  %s57_s13 = scalar_lea.hbm %s158_s1, 256 }
   0x2   :  { %s17_s10 = sshll.u32 %s105_s9, 4  ;;  %p58_p0 = scmp.ne.s32.totalorder %s158_s1, %s57_s13  ;;  %s18_s10 = int_to_ptr.vmem [resolvable:$true] %s17_s10 }
   0x3   :  { %p61_p1 = scmp.lt.u32.totalorder %s57_s13, %s158_s1 }
   0x5   :  { %p63_p2 = pnand %p61_p1, %p58_p0 }
   0x7   :  { %66 = shalt.err (!%p63_p2)
}
   0x8   :  { %s67_s18 = scalar_lea.vmem %s18_s10, 256  ;;  %p72_p4 = scmp.lt.s32.totalorder %s18_s10, %s18_s10 }
   0x9   :  { %p68_p3 = scmp.ne.s32.totalorder %s18_s10, %s67_s18  ;;  %p73_p5 = scmp.lt.s32.totalorder %s67_s18, %s67_s18 }
   0xb   :  { %p74_p6 = por %p73_p5, %p72_p4 }
   0xd   :  { %p75_p7 = pnand %p74_p6, %p68_p3 }
   0xf   :  { %78 = shalt.err (!%p75_p7)
}
  0x10   :  { %s106_s19 = smov 128   ;;  %s107_s20 = smov 8  }
  0x11   :  { %23 = dma.hbm_to_vmem [thread:$0]  %s158_s1, 256, %s18_s10, [#allocation4], %s106_s19, %s106_s19, %s107_s20  }
  0x12   :  { %101 = dma.done.wait [#allocation4], 256  }
  0x13   :  { %102 = vsyncadd [#allocation4], 4294967040  ;;  %s28_s25 = ssub.f32 0.0, %s157_s0  ;;  %s108_s26 = smov [#allocation6]   ;;  %v29_v1 = vld [vmem:[#allocation3] sm:$0xff]  ;;  %v30_v2 = vld [vmem:[#allocation3 + $0x8] sm:$0xff] }
  0x14   :  { %s41_s27 = sshll.u32 %s108_s26, 4  ;;  %s42_s27 = int_to_ptr.vmem [resolvable:$true] %s41_s27 }
  0x15   :  { %v31_v0 = vstv %s28_s25  ;;  %s79_s28 = scalar_lea.vmem %s42_s27, 256  ;;  %p84_p9 = scmp.lt.s32.totalorder %s42_s27, %s42_s27 }
  0x16   :  { %v32_v3 = vmul.f32 %v31_v0, %v29_v1  ;;  %v33_v4 = vmul.f32 %v31_v0, %v30_v2  ;;  %p80_p8 = scmp.ne.s32.totalorder %s42_s27, %s79_s28  ;;  %p85_p10 = scmp.lt.s32.totalorder %s79_s28, %s79_s28 }
  0x18   :  { %34 = vst [vmem:[#allocation6] sm:$0xff] %v32_v3  ;;  %35 = vst [vmem:[#allocation6 + $0x8] sm:$0xff] %v33_v4  ;;  %p86_p11 = por %p85_p10, %p84_p9 }
  0x1a   :  { %p87_p12 = pnand %p86_p11, %p80_p8 }
  0x1c   :  { %90 = shalt.err (!%p87_p12)
}
  0x1d   :  { %s91_s0 = scalar_lea.hbm %s159_s2, 256 }
  0x1e   :  { %p92_p13 = scmp.ne.s32.totalorder %s159_s2, %s91_s0  ;;  %p95_p0 = scmp.lt.u32.totalorder %s91_s0, %s159_s2 }
  0x20   :  { %p97_p1 = pnand %p95_p0, %p92_p13 }
  0x22   :  { %100 = shalt.err (!%p97_p1)
}
  0x23   :  { %47 = dma.vmem_to_hbm [thread:$0]  %s42_s27, 256, %s159_s2, [#allocation5], %s106_s19, %s106_s19, %s107_s20  }
  0x24   :  { %103 = dma.done.wait [#allocation5], 256  }
  0x25   :  { %104 = vsyncadd [#allocation5], 4294967040 }
  0x26   :  { %51 = vsyncpa [#allocation4], 1 }
  0x27   :  { %52 = vsyncpa [#allocation5], 1 }

</bundles_post_ra>
